<compile_context>
chip_gen: v7x
topology: tpu7x:2x2x1
jax: 0.10.0
libtpu: 0.0.40
codegen_flags: <defaults>
</compile_context>

<pallas_src>
import jax
import jax.numpy as jnp
from jax.experimental import pallas as pl
from jax.experimental.pallas import tpu as pltpu


_LANE = 128
_VMEM_LIMIT_BYTES = 32 * 1024 * 1024          # raise v5e's 16 MiB scoped default; safe on v6e/v7x
_DEFAULT_BUDGET_BYTES = 12 * 1024 * 1024      # conservative pipeline working-set budget


# --------------------------------------------------------------------------------------
# Kernels
# --------------------------------------------------------------------------------------
def _linear_bias_kernel(x_ref, w_ref, b_ref, o_ref):
    """o = x @ w + b.  x:(tm,K)  w:(K,tn)  b:(1,tn)  o:(tm,tn).  Single K block."""
    acc = jnp.dot(x_ref[...], w_ref[...], preferred_element_type=jnp.float32)
    o_ref[...] = (acc + b_ref[...].astype(jnp.float32)).astype(o_ref.dtype)


def _linear_nobias_kernel(x_ref, w_ref, o_ref):
    o_ref[...] = jnp.dot(
        x_ref[...], w_ref[...], preferred_element_type=jnp.float32
    ).astype(o_ref.dtype)


def _linear_bias_kblock_kernel(x_ref, w_ref, b_ref, o_ref, acc_ref):
    """K-blocked (P3): init at k==0, accumulate in f32 VMEM scratch, fused-bias store at last k."""
    @pl.when(pl.program_id(2) == 0)
    def _():
        acc_ref[...] = jnp.zeros_like(acc_ref)

    acc_ref[...] += jnp.dot(x_ref[...], w_ref[...], preferred_element_type=jnp.float32)

    @pl.when(pl.program_id(2) == pl.num_programs(2) - 1)
    def _():
        o_ref[...] = (acc_ref[...] + b_ref[...].astype(jnp.float32)).astype(o_ref.dtype)


def _linear_nobias_kblock_kernel(x_ref, w_ref, o_ref, acc_ref):
    @pl.when(pl.program_id(2) == 0)
    def _():
        acc_ref[...] = jnp.zeros_like(acc_ref)

    acc_ref[...] += jnp.dot(x_ref[...], w_ref[...], preferred_element_type=jnp.float32)

    @pl.when(pl.program_id(2) == pl.num_programs(2) - 1)
    def _():
        o_ref[...] = acc_ref[...].astype(o_ref.dtype)


# --------------------------------------------------------------------------------------
# Tile selection
# --------------------------------------------------------------------------------------
def _sublane_align(itemsize):
    # (8,128) tiles for 32-bit, (16,128) for bf16, (32,128) for int8/fp8.
    return max(8, 32 // int(itemsize))


def _choose_tiles(B, K, N, x_itemsize, w_itemsize, out_itemsize,
                  budget_bytes=_DEFAULT_BUDGET_BYTES, block_k=None):
    """Pick (tm, tk, tn) under a VMEM budget.

    tk: whole K when modest (no K grid axis / accumulator), else an even divisor of K.
    tn: full extent or 128-multiple (lane-dense output stores).
    tm: as large as the budget allows (amortizes ~0.35us/step), sublane-aligned for dtype.
    """
    sub_m = _sublane_align(x_itemsize)

    if block_k is not None:
        assert K % block_k == 0, "block_k must evenly divide input_dim"
        tk = int(block_k)
    elif K <= 1024:
        tk = K
    else:
        tk = next((d for d in (1024, 512, 256, 128) if K % d == 0), K)

    def max_tm(tn_):
        fixed = 2 * tk * tn_ * w_itemsize + 2 * tn_ * 4            # W tiles (x2 buf) + bias
        per_row = 2 * tk * x_itemsize + 2 * tn_ * out_itemsize     # x + out tiles, per row
        if tk < K:
            per_row += 4 * tn_                                     # f32 accumulator scratch
        avail = budget_bytes - fixed
        rows = max(avail // per_row, 0) if avail > 0 else 0
        if rows >= B:
            return B
        return max(sub_m, (int(rows) // sub_m) * sub_m)

    # Output lane dim: full extent when small, otherwise largest 128-multiple that still
    # leaves room for a decent tm.
    tn = N if N <= 512 else 512
    while tn > _LANE and tn % _LANE == 0 and max_tm(tn) < min(B, 128):
        tn -= _LANE

    tm = min(max_tm(tn), 1024)
    if tm > B:
        tm = B

    # v7x megacore: guarantee >= 2 blocks along the parallel i axis for mid-size problems.
    if B > 128 and tm >= B:
        half = -(-B // 2)
        tm = ((half + sub_m - 1) // sub_m) * sub_m

    return tm, tk, tn


# --------------------------------------------------------------------------------------
# Wrapper (forward pass of LinearProjection)
# --------------------------------------------------------------------------------------
def linear_projection_forward(inputs, weight, bias=None, *, block_k=None,
                              vmem_budget_bytes=_DEFAULT_BUDGET_BYTES):
    """inputs: [..., input_dim], weight: [output_dim, input_dim] (PyTorch nn.Linear layout),
    bias: [output_dim] or None.  Returns [..., output_dim] = inputs @ W.T + b."""
    in_dim = inputs.shape[-1]
    out_dim, in_dim2 = weight.shape
    assert in_dim == in_dim2

    lead = inputs.shape[:-1]
    x2d = inputs.reshape(-1, in_dim)
    B = x2d.shape[0]
    out_dtype = inputs.dtype

    # One-time transpose to [input_dim, output_dim]: RHS is lane-dense along N for the MXU and
    # no per-tile trans_b relayout is needed.
    # TODO(synk): in a real model, hoist this to parameter-load time so it is done exactly once.
    w_t = jnp.transpose(weight)

    x_itemsize = jnp.dtype(x2d.dtype).itemsize
    w_itemsize = jnp.dtype(w_t.dtype).itemsize
    out_itemsize = jnp.dtype(out_dtype).itemsize

    tm, tk, tn = _choose_tiles(B, in_dim, out_dim, x_itemsize, w_itemsize, out_itemsize,
                               budget_bytes=vmem_budget_bytes, block_k=block_k)
    k_blocks = pl.cdiv(in_dim, tk)
    grid_ij = (pl.cdiv(B, tm), pl.cdiv(out_dim, tn))

    cost = pl.CostEstimate(
        flops=2 * B * out_dim * in_dim,
        transcendentals=0,
        bytes_accessed=(B * in_dim * x_itemsize
                        + in_dim * out_dim * w_itemsize
                        + B * out_dim * out_itemsize
                        + (out_dim * jnp.dtype(bias.dtype).itemsize if bias is not None else 0)),
    )
    out_shape = jax.ShapeDtypeStruct((B, out_dim), out_dtype)

    operands = [x2d, w_t]
    if bias is not None:
        operands.append(bias.reshape(1, out_dim))

    if k_blocks == 1:
        # Fast path: full-K panels, no accumulator.  If out_dim also fits one tile, the weight
        # index_map is constant -> the whole weight is DMAed once and stays VMEM-resident across
        # every batch tile (no redundant weight re-fetch).
        in_specs = [
            pl.BlockSpec((tm, in_dim), lambda i, j: (i, 0)),
            pl.BlockSpec((in_dim, tn), lambda i, j: (0, j)),
        ]
        if bias is not None:
            in_specs.append(pl.BlockSpec((1, tn), lambda i, j: (0, j)))
        kernel = _linear_bias_kernel if bias is not None else _linear_nobias_kernel
        out2d = pl.pallas_call(
            kernel,
            out_shape=out_shape,
            grid=grid_ij,
            in_specs=in_specs,
            out_specs=pl.BlockSpec((tm, tn), lambda i, j: (i, j)),
            compiler_params=pltpu.CompilerParams(
                dimension_semantics=("parallel", "parallel"),
                vmem_limit_bytes=_VMEM_LIMIT_BYTES),
            cost_estimate=cost,
        )(*operands)
    else:
        # K-blocked path: reduction axis innermost + "arbitrary", f32 VMEM accumulator.
        in_specs = [
            pl.BlockSpec((tm, tk), lambda i, j, k: (i, k)),
            pl.BlockSpec((tk, tn), lambda i, j, k: (k, j)),
        ]
        if bias is not None:
            in_specs.append(pl.BlockSpec((1, tn), lambda i, j, k: (0, j)))
        kernel = (_linear_bias_kblock_kernel if bias is not None
                  else _linear_nobias_kblock_kernel)
        out2d = pl.pallas_call(
            kernel,
            out_shape=out_shape,
            grid=grid_ij + (k_blocks,),
            in_specs=in_specs,
            out_specs=pl.BlockSpec((tm, tn), lambda i, j, k: (i, j)),
            scratch_shapes=[pltpu.VMEM((tm, tn), jnp.float32)],
            compiler_params=pltpu.CompilerParams(
                dimension_semantics=("parallel", "parallel", "arbitrary"),
                vmem_limit_bytes=_VMEM_LIMIT_BYTES),
            cost_estimate=cost,
        )(*operands)

    return out2d.reshape(*lead, out_dim)


if __name__ == "__main__":
    # Small shapes consistent with the module: batch=4, seq=8, input_dim=32, output_dim=64.
    batch, seq = 4, 8
    input_dim, output_dim = 32, 64

    key = jax.random.PRNGKey(0)
    k_x, k_w, k_b, k_x2, k_w2, k_b2 = jax.random.split(key, 6)

    inputs = jax.random.normal(k_x, (batch, seq, input_dim), dtype=jnp.float32)
    # nn.Linear default init: uniform in +/- 1/sqrt(fan_in).
    bound = 1.0 / jnp.sqrt(jnp.float32(input_dim))
    weight = jax.random.uniform(k_w, (output_dim, input_dim), dtype=jnp.float32,
                                minval=-bound, maxval=bound)
    bias = jax.random.uniform(k_b, (output_dim,), dtype=jnp.float32,
                              minval=-bound, maxval=bound)

    hp = jax.lax.Precision.HIGHEST  # f32-accurate reference to match the f32-accumulating kernel

    out = jax.block_until_ready(linear_projection_forward(inputs, weight, bias))
    ref = jnp.einsum("bsd,od->bso", inputs, weight, precision=hp) + bias
    assert out.shape == (batch, seq, output_dim)
    assert jnp.allclose(out, ref, atol=1e-4, rtol=1e-4)

    # bias=False path.
    out_nb = jax.block_until_ready(linear_projection_forward(inputs, weight, None))
    ref_nb = jnp.einsum("bsd,od->bso", inputs, weight, precision=hp)
    assert jnp.allclose(out_nb, ref_nb, atol=1e-4, rtol=1e-4)

    # K-blocked accumulator path (forced via block_k) on a slightly larger hidden dim.
    in2, out2 = 256, 128
    x2 = jax.random.normal(k_x2, (batch, seq, in2), dtype=jnp.float32)
    b2d = 1.0 / jnp.sqrt(jnp.float32(in2))
    w2 = jax.random.uniform(k_w2, (out2, in2), dtype=jnp.float32, minval=-b2d, maxval=b2d)
    b2 = jax.random.uniform(k_b2, (out2,), dtype=jnp.float32, minval=-b2d, maxval=b2d)
    out_kb = jax.block_until_ready(linear_projection_forward(x2, w2, b2, block_k=128))
    ref_kb = jnp.einsum("bsd,od->bso", x2, w2, precision=hp) + b2
    assert jnp.allclose(out_kb, ref_kb, atol=1e-4, rtol=1e-4)

    print("KERNEL_OK")
</pallas_src>

<mosaic_0001>
module attributes {stable_mosaic.version = 11 : i64} {
  func.func @_linear_bias_kernel(%arg0: i32, %arg1: i32, %arg2: memref<32x32xf32, #tpu.memory_space<vmem>>, %arg3: memref<32x64xf32, #tpu.memory_space<vmem>>, %arg4: memref<1x64xf32, #tpu.memory_space<vmem>>, %arg5: memref<32x64xf32, #tpu.memory_space<vmem>>) attributes {dimension_semantics = [#tpu.dimension_semantics<parallel>, #tpu.dimension_semantics<parallel>], iteration_bounds = array<i64: 1, 1>, scalar_prefetch = 0 : i64, scratch_operands = 0 : i64, tpu.core_type = #tpu.core_type<tc>, window_params = [{transform_indices = @transform_0, window_bounds = array<i64: 32, 32>}, {transform_indices = @transform_1, window_bounds = array<i64: 32, 64>}, {transform_indices = @transform_2, window_bounds = array<i64: 1, 64>}, {transform_indices = @transform_3, window_bounds = array<i64: 32, 64>}]} {
    %c0 = arith.constant 0 : index
    %c0_0 = arith.constant 0 : index
    %0 = vector.load %arg2[%c0, %c0_0] : memref<32x32xf32, #tpu.memory_space<vmem>>, vector<32x32xf32>
    %c0_1 = arith.constant 0 : index
    %c0_2 = arith.constant 0 : index
    %1 = vector.load %arg3[%c0_1, %c0_2] : memref<32x64xf32, #tpu.memory_space<vmem>>, vector<32x64xf32>
    %cst = arith.constant dense<0.000000e+00> : vector<32x64xf32>
    %2 = tpu.matmul %0, %1, %cst {dimension_numbers = #tpu.dot_dimension_numbers<[1], [0], [0], [1], [0, 0, 1, 1], [], []>} : vector<32x32xf32>, vector<32x64xf32>, vector<32x64xf32> -> vector<32x64xf32>
    %c0_3 = arith.constant 0 : index
    %c0_4 = arith.constant 0 : index
    %3 = vector.load %arg4[%c0_3, %c0_4] : memref<1x64xf32, #tpu.memory_space<vmem>>, vector<1x64xf32>
    %4 = vector.broadcast %3 : vector<1x64xf32> to vector<32x64xf32>
    %5 = arith.addf %2, %4 : vector<32x64xf32>
    %c0_5 = arith.constant 0 : index
    %c0_6 = arith.constant 0 : index
    %6 = vector.load %arg5[%c0_5, %c0_6] : memref<32x64xf32, #tpu.memory_space<vmem>>, vector<32x64xf32>
    tpu.vector_store %arg5[%c0_5, %c0_6], %5 {strides = array<i32>} : memref<32x64xf32, #tpu.memory_space<vmem>>, vector<32x64xf32>,
    return
  }
  func.func @transform_0(%arg0: i32, %arg1: i32) -> (i32, i32) {
    %c0_i32 = arith.constant 0 : i32
    %c0_i32_0 = arith.constant 0 : i32
    return %arg0, %c0_i32 : i32, i32
  }
  func.func @transform_1(%arg0: i32, %arg1: i32) -> (i32, i32) {
    %c0_i32 = arith.constant 0 : i32
    %c0_i32_0 = arith.constant 0 : i32
    return %c0_i32, %arg1 : i32, i32
  }
  func.func @transform_2(%arg0: i32, %arg1: i32) -> (i32, i32) {
    %c0_i32 = arith.constant 0 : i32
    %c0_i32_0 = arith.constant 0 : i32
    return %c0_i32, %arg1 : i32, i32
  }
  func.func @transform_3(%arg0: i32, %arg1: i32) -> (i32, i32) {
    %c0_i32 = arith.constant 0 : i32
    return %arg0, %arg1 : i32, i32
  }
}

</mosaic_0001>

<bundles_post_ra>
// kernel: tpu_custom_call.1
= control target key start
LH: loop header
LB: loop body
LE: loop exit
PB: predicated region body
PF: predicated region fallthrough
CT: control target
= control target key end

     0   :  { %8 = vsyncpa [#allocation3], 0  ;;  %s372_s0 = inlined_call_operand.hbm [shape: f32[32,32], index: 0, kind: input, shape index: {}]   ;;  %s373_s1 = inlined_call_operand.hbm [shape: f32[32,64], index: 1, kind: input, shape index: {}]   ;;  %s374_s2 = inlined_call_operand.vmem [shape: f32[1,64], index: 2, kind: input, shape index: {}]   ;;  %s375_s3 = inlined_call_operand.hbm [shape: f32[32,64], index: 3, kind: output, shape index: {}]  }
   0x1   :  { %9 = vsyncpa [#allocation6], 0 }
   0x2   :  { %10 = vsyncpa [#allocation4], 0  ;;  %s295_s12 = smov [#allocation2]   ;;  %s223_s16 = scalar_lea.hbm %s372_s0, 512 }
   0x3   :  { %s16_s13 = sshll.u32 %s295_s12, 4  ;;  %p224_p0 = scmp.ne.s32.totalorder %s372_s0, %s223_s16  ;;  %s17_s13 = int_to_ptr.vmem [resolvable:$true] %s16_s13 }
   0x4   :  { %p227_p1 = scmp.lt.u32.totalorder %s223_s16, %s372_s0 }
   0x6   :  { %p229_p2 = pnand %p227_p1, %p224_p0 }
   0x8   :  { %232 = shalt.err (!%p229_p2)
}
   0x9   :  { %s233_s21 = scalar_lea.vmem %s17_s13, 512  ;;  %p238_p4 = scmp.lt.s32.totalorder %s17_s13, %s17_s13 }
   0xa   :  { %p234_p3 = scmp.ne.s32.totalorder %s17_s13, %s233_s21  ;;  %p239_p5 = scmp.lt.s32.totalorder %s233_s21, %s233_s21 }
   0xc   :  { %p240_p6 = por %p239_p5, %p238_p4 }
   0xe   :  { %p241_p7 = pnand %p240_p6, %p234_p3 }
  0x10   :  { %244 = shalt.err (!%p241_p7)
}
  0x11   :  { %s296_s22 = smov 128   ;;  %s297_s23 = smov 8  }
  0x12   :  { %22 = dma.hbm_to_vmem [thread:$0]  %s372_s0, 512, %s17_s13, [#allocation3], %s296_s22, %s296_s22, %s297_s23  }
  0x13   :  { %s298_s26 = smov [#allocation5]   ;;  %s245_s30 = scalar_lea.hbm %s373_s1, 512 }
  0x14   :  { %s28_s27 = sshll.u32 %s298_s26, 4  ;;  %p246_p8 = scmp.ne.s32.totalorder %s373_s1, %s245_s30  ;;  %s29_s27 = int_to_ptr.vmem [resolvable:$true] %s28_s27 }
  0x15   :  { %p249_p9 = scmp.lt.u32.totalorder %s245_s30, %s373_s1 }
  0x17   :  { %p251_p10 = pnand %p249_p9, %p246_p8 }
  0x19   :  { %254 = shalt.err (!%p251_p10)
}
  0x1a   :  { %s255_s8 = scalar_lea.vmem %s29_s27, 512  ;;  %p260_p12 = scmp.lt.s32.totalorder %s29_s27, %s29_s27 }
  0x1b   :  { %p256_p11 = scmp.ne.s32.totalorder %s29_s27, %s255_s8  ;;  %p261_p13 = scmp.lt.s32.totalorder %s255_s8, %s255_s8 }
  0x1d   :  { %p262_p0 = por %p261_p13, %p260_p12 }
  0x1f   :  { %p263_p1 = pnand %p262_p0, %p256_p11 }
  0x21   :  { %266 = shalt.err (!%p263_p1)
}
  0x22   :  { %34 = dma.hbm_to_vmem [thread:$0]  %s373_s1, 512, %s29_s27, [#allocation6], %s296_s22, %s296_s22, %s297_s23  }
  0x23   :  { %289 = dma.done.wait [#allocation3], 512  }
  0x24   :  { %290 = vsyncadd [#allocation3], 4294966784 }
  0x25   :  { %291 = dma.done.wait [#allocation6], 512  }
  0x26   :  { %292 = vsyncadd [#allocation6], 4294966784  ;;  %vm58_vm0 = vcmask 261120   ;;  %v47_v0 = vld [vmem:[#allocation5] sm:$0xff]  ;;  %v48_v1 = vld [vmem:[#allocation5 + $0x8] sm:$0xff]  ;;  %s299_s11 = smov [#allocation7]  }
  0x27   :  { %v49_v2 = vld [vmem:[#allocation5 + $0x10] sm:$0xff]  ;;  %v206_v3 = vpack.c.bf16 %v48_v1, %v47_v0  ;;  %v50_v4 = vld [vmem:[#allocation5 + $0x18] sm:$0xff]  ;;  %v43_v5 = vld [vmem:[#allocation2] sm:$0xff]  ;;  %s166_s12 = sshll.u32 %s299_s11, 4  ;;  %vm156_vm1 = vcmask 523264   ;;  %s167_s12 = int_to_ptr.vmem [resolvable:$true] %s166_s12 }
  0x28   :  { %v45_v6 = vld [vmem:[#allocation2 + $0x10] sm:$0xff]  ;;  %v210_v7 = vpack.c.bf16 %v50_v4, %v49_v2  ;;  %200 = vmatprep.mubr.msk.f32.mxu0 %vm58_vm0, %v43_v5  ;;  %v44_v8 = vld [vmem:[#allocation2 + $0x8] sm:$0xff]  ;;  %v46_v9 = vld [vmem:[#allocation2 + $0x18] sm:$0xff]  ;;  %s267_s13 = scalar_lea.vmem %s167_s12, 512  ;;  %p272_p3 = scmp.lt.s32.totalorder %s167_s12, %s167_s12 }
  0x29   :  { %203 = vmatprep.mubr.msk.f32.mxu1 %vm58_vm0, %v45_v6  ;;  %207 = vmatprep.subr.bf16.mxu0 %v206_v3  ;;  %v179_v10 = vld [vmem:[%s374_s2] ss:$0 sm:$0xff]  ;;  %p268_p2 = scmp.ne.s32.totalorder %s167_s12, %s267_s13  ;;  %p273_p4 = scmp.lt.s32.totalorder %s267_s13, %s267_s13 }
  0x2a   :  { %214 = vmatprep.subr.bf16.mxu1 %v206_v3  ;;  %209 = vmatpush3.bf16.msra.mxu0 %v206_v3 }
  0x2b   :  { %216 = vmatpush3.bf16.msra.mxu1 %v206_v3  ;;  %211 = vmatprep.subr.bf16.mxu0 %v210_v7  ;;  %p274_p5 = por %p273_p4, %p272_p3 }
  0x2c   :  { %215 = vmatprep.subr.bf16.mxu1 %v210_v7 }
  0x2d   :  { %p275_p6 = pnand %p274_p5, %p268_p2 }
  0x2e   :  { %213 = vmatpush3.bf16.msra.mxu0 %v210_v7 }
  0x2f   :  { %217 = vmatpush3.bf16.msra.mxu1 %v210_v7 }
  0x31   :  { %201 = vmatmul.mubr.msk.f32.vlgmr.msra.gmra.mrb[0].mxu0 %vm58_vm0, %v44_v8 }
  0x32   :  { %204 = vmatmul.mubr.msk.f32.vlgmr.msra.gmra.mrb[0].mxu1 %vm58_vm0, %v46_v9 }
 0x104   :  { %v202_v11 = vpop.f32.mrb[0].mxu0 }
 0x105   :  { %v205_v12 = vpop.f32.mrb[0].mxu1  ;;  %v143_v13 = vadd.f32 %v202_v11, %v179_v10  ;;  %v137_v15 = vpop.f32.mrb[1].mxu0 }
 0x106   :  { %v153_v14 = vadd.f32 %v205_v12, %v179_v10  ;;  %v147_v16 = vpop.f32.mrb[1].mxu1  ;;  %v138_v17 = vadd.f32 %v179_v10, %v137_v15 }
 0x107   :  { %v148_v18 = vadd.f32 %v179_v10, %v147_v16  ;;  %158 = vst.msk [vmem:[#allocation7 + $0x8] sm:$0xff] %vm156_vm1, %v143_v13 }
 0x108   :  { %160 = vst.msk [vmem:[#allocation7 + $0x18] sm:$0xff] %vm156_vm1, %v153_v14  ;;  %157 = vst.msk [vmem:[#allocation7] sm:$0xff] %vm156_vm1, %v138_v17 }
 0x109   :  { %159 = vst.msk [vmem:[#allocation7 + $0x10] sm:$0xff] %vm156_vm1, %v148_v18 }
 0x10a   :  { %278 = shalt.err (!%p275_p6)
}
 0x10b   :  { %s279_s15 = scalar_lea.hbm %s375_s3, 512 }
 0x10c   :  { %p280_p7 = scmp.ne.s32.totalorder %s375_s3, %s279_s15  ;;  %p283_p8 = scmp.lt.u32.totalorder %s279_s15, %s375_s3 }
 0x10e   :  { %p285_p9 = pnand %p283_p8, %p280_p7 }
 0x110   :  { %288 = shalt.err (!%p285_p9)
}
 0x111   :  { %172 = dma.vmem_to_hbm [thread:$0]  %s167_s12, 512, %s375_s3, [#allocation4], %s296_s22, %s296_s22, %s297_s23  }
 0x112   :  { %293 = dma.done.wait [#allocation4], 512  }
 0x113   :  { %294 = vsyncadd [#allocation4], 4294966784 }
 0x114   :  { %176 = vsyncpa [#allocation3], 1 }
 0x115   :  { %177 = vsyncpa [#allocation6], 1 }
 0x116   :  { %178 = vsyncpa [#allocation4], 1 }

</bundles_post_ra>
